<compile_context>
chip_gen: v7x
topology: tpu7x:2x2x1
jax: 0.10.0
libtpu: 0.0.40
codegen_flags: <defaults>
</compile_context>

<pallas_src>
import functools

import jax
import jax.numpy as jnp
from jax.experimental import pallas as pl
from jax.experimental.pallas import tpu as pltpu


def _round_up(x, m):
    return ((x + m - 1) // m) * m


def _value_kernel(x_ref, w1_ref, b1_ref, w2_ref, b2_ref, w3_ref, b3_ref,
                  out_ref):
    # x_ref: [TB, S] bf16; weights bf16; biases f32; w3_ref: [1, H] f32.
    x = x_ref[...]

    # Layer 1: [TB, S] @ [S, H] -> f32 accumulate, bias + relu in f32.
    h = jnp.dot(x, w1_ref[...], preferred_element_type=jnp.float32)
    h = jnp.maximum(h + b1_ref[...], 0.0)

    # Layer 2: [TB, H] @ [H, H].
    h = jnp.dot(h.astype(w2_ref.dtype), w2_ref[...],
                preferred_element_type=jnp.float32)
    h = jnp.maximum(h + b2_ref[...], 0.0)

    # Layer 3: [H] -> 1.  Done as VPU multiply + cross-lane (XLU) reduction
    # instead of a 1-lane-wide MXU pass.  Scalar bias read from SMEM.
    v = jnp.sum(h * w3_ref[...], axis=-1, keepdims=True) + b3_ref[0, 0]
    out_ref[...] = v.astype(out_ref.dtype)


@functools.partial(jax.jit, static_argnames=("tile_b",))
def value_net_forward(state, params, tile_b=512):
    """Pallas forward of ValueNet.  state: [B, S] f32 -> value [B, 1] f32."""
    B, S = state.shape
    H = params["w1"].shape[1]

    # Tile the batch axis; pad B up to a multiple of the tile (rows >= B are
    # garbage and sliced off at the end).
    tile_b = min(tile_b, _round_up(B, 8))
    B_pad = _round_up(B, tile_b)
    if B_pad != B:
        state = jnp.pad(state, ((0, B_pad - B), (0, 0)))

    # bf16 matmul operands (MXU-native), f32 everywhere else.
    x_bf16 = state.astype(jnp.bfloat16)
    w1 = params["w1"].astype(jnp.bfloat16)
    w2 = params["w2"].astype(jnp.bfloat16)
    b1 = params["b1"]                       # [1, H] f32
    b2 = params["b2"]                       # [1, H] f32
    w3_row = params["w3"].reshape(1, H)     # [1, H] f32 (VPU operand)
    b3 = params["b3"].reshape(1, 1)         # scalar -> SMEM

    grid = (B_pad // tile_b,)

    in_specs = [
        pl.BlockSpec((tile_b, S), lambda i: (i, 0)),          # state (streamed)
        pl.BlockSpec((S, H), lambda i: (0, 0)),               # w1 (resident)
        pl.BlockSpec((1, H), lambda i: (0, 0)),               # b1
        pl.BlockSpec((H, H), lambda i: (0, 0)),               # w2
        pl.BlockSpec((1, H), lambda i: (0, 0)),               # b2
        pl.BlockSpec((1, H), lambda i: (0, 0)),               # w3 row
        pl.BlockSpec(memory_space=pltpu.MemorySpace.SMEM),    # b3 scalar
    ]
    out_specs = pl.BlockSpec((tile_b, 1), lambda i: (i, 0))
    out_shape = jax.ShapeDtypeStruct((B_pad, 1), jnp.float32)

    flops = 2 * B_pad * (S * H + H * H + H)
    bytes_accessed = (
        2 * B_pad * S + 4 * B_pad            # streamed x (bf16) + out (f32)
        + 2 * (S * H + H * H)                # bf16 weights
        + 4 * (3 * H + 1)                    # f32 biases + w3 row
    )
    cost = pl.CostEstimate(flops=flops, transcendentals=0,
                           bytes_accessed=bytes_accessed)

    out = pl.pallas_call(
        _value_kernel,
        grid=grid,
        in_specs=in_specs,
        out_specs=out_specs,
        out_shape=out_shape,
        compiler_params=pltpu.CompilerParams(
            dimension_semantics=("parallel",)),
        cost_estimate=cost,
    )(x_bf16, w1, b1, w2, b2, w3_row, b3)

    return out[:B]


def _xavier_uniform(key, fan_in, fan_out, gain=1.0):
    # Matches torch.nn.init.xavier_uniform_ (gain=1).  Stored [fan_in, fan_out]
    # so the kernel computes x @ W (torch stores [out, in] and does x @ W.T).
    limit = gain * jnp.sqrt(6.0 / (fan_in + fan_out))
    return jax.random.uniform(key, (fan_in, fan_out), dtype=jnp.float32,
                              minval=-limit, maxval=limit)


def init_value_params(key, state_dim, hidden_dim):
    k1, k2, k3 = jax.random.split(key, 3)
    return {
        "w1": _xavier_uniform(k1, state_dim, hidden_dim),
        "b1": jnp.zeros((1, hidden_dim), jnp.float32),
        "w2": _xavier_uniform(k2, hidden_dim, hidden_dim),
        "b2": jnp.zeros((1, hidden_dim), jnp.float32),
        "w3": _xavier_uniform(k3, hidden_dim, 1),
        "b3": jnp.zeros((1, 1), jnp.float32),
    }


def _reference_forward(state, params):
    """Pure-JAX reference using the same bf16-matmul / f32-accumulate recipe."""
    x = state.astype(jnp.bfloat16)
    h = jnp.dot(x, params["w1"].astype(jnp.bfloat16),
                preferred_element_type=jnp.float32) + params["b1"]
    h = jax.nn.relu(h)
    h = jnp.dot(h.astype(jnp.bfloat16), params["w2"].astype(jnp.bfloat16),
                preferred_element_type=jnp.float32) + params["b2"]
    h = jax.nn.relu(h)
    return jnp.sum(h * params["w3"].reshape(1, -1), axis=-1,
                   keepdims=True) + params["b3"][0, 0]


if __name__ == "__main__":
    batch, state_dim, hidden_dim = 8, 16, 32

    key = jax.random.PRNGKey(0)
    k_state, k_params, k_big = jax.random.split(key, 3)

    state = jax.random.normal(k_state, (batch, state_dim), dtype=jnp.float32)
    params = init_value_params(k_params, state_dim, hidden_dim)

    v = value_net_forward(state, params)
    jax.block_until_ready(v)
    v_ref = _reference_forward(state, params)
    assert v.shape == (batch, 1)
    assert jnp.allclose(v, v_ref, atol=1e-3, rtol=1e-3)

    # Exercise the multi-tile grid + padding path (B not a tile multiple).
    big_state = jax.random.normal(k_big, (200, state_dim), dtype=jnp.float32)
    v_big = value_net_forward(big_state, params, tile_b=64)
    jax.block_until_ready(v_big)
    v_big_ref = _reference_forward(big_state, params)
    assert v_big.shape == (200, 1)
    assert jnp.allclose(v_big, v_big_ref, atol=1e-3, rtol=1e-3)

    print("KERNEL_OK")
</pallas_src>

<mosaic_0001>
module attributes {stable_mosaic.version = 11 : i64} {
  func.func @_value_kernel(%arg0: i32, %arg1: memref<8x16xbf16, #tpu.memory_space<vmem>>, %arg2: memref<16x32xbf16, #tpu.memory_space<vmem>>, %arg3: memref<1x32xf32, #tpu.memory_space<vmem>>, %arg4: memref<32x32xbf16, #tpu.memory_space<vmem>>, %arg5: memref<1x32xf32, #tpu.memory_space<vmem>>, %arg6: memref<1x32xf32, #tpu.memory_space<vmem>>, %arg7: memref<1x1xf32, #tpu.memory_space<smem>>, %arg8: memref<8x1xf32, #tpu.memory_space<vmem>>) attributes {dimension_semantics = [#tpu.dimension_semantics<parallel>], iteration_bounds = array<i64: 1>, scalar_prefetch = 0 : i64, scratch_operands = 0 : i64, tpu.core_type = #tpu.core_type<tc>, window_params = [{transform_indices = @transform_0, window_bounds = array<i64: 8, 16>}, {pipeline_mode = #tpu.pipeline_mode<synchronous>, transform_indices = @transform_1, window_bounds = array<i64: 16, 32>}, {pipeline_mode = #tpu.pipeline_mode<synchronous>, transform_indices = @transform_2, window_bounds = array<i64: 1, 32>}, {pipeline_mode = #tpu.pipeline_mode<synchronous>, transform_indices = @transform_3, window_bounds = array<i64: 32, 32>}, {pipeline_mode = #tpu.pipeline_mode<synchronous>, transform_indices = @transform_4, window_bounds = array<i64: 1, 32>}, {pipeline_mode = #tpu.pipeline_mode<synchronous>, transform_indices = @transform_5, window_bounds = array<i64: 1, 32>}, {transform_indices = @transform_6, window_bounds = array<i64: 1, 1>}, {transform_indices = @transform_7, window_bounds = array<i64: 8, 1>}]} {
    %c0 = arith.constant 0 : index
    %c0_0 = arith.constant 0 : index
    %0 = vector.load %arg1[%c0, %c0_0] : memref<8x16xbf16, #tpu.memory_space<vmem>>, vector<8x16xbf16>
    %c0_1 = arith.constant 0 : index
    %c0_2 = arith.constant 0 : index
    %1 = vector.load %arg2[%c0_1, %c0_2] : memref<16x32xbf16, #tpu.memory_space<vmem>>, vector<16x32xbf16>
    %cst = arith.constant dense<0.000000e+00> : vector<8x32xf32>
    %2 = tpu.matmul %0, %1, %cst {dimension_numbers = #tpu.dot_dimension_numbers<[1], [0], [0], [1], [0, 0, 1, 1], [], []>} : vector<8x16xbf16>, vector<16x32xbf16>, vector<8x32xf32> -> vector<8x32xf32>
    %c0_3 = arith.constant 0 : index
    %c0_4 = arith.constant 0 : index
    %3 = vector.load %arg3[%c0_3, %c0_4] : memref<1x32xf32, #tpu.memory_space<vmem>>, vector<1x32xf32>
    %4 = vector.broadcast %3 : vector<1x32xf32> to vector<8x32xf32>
    %5 = arith.addf %2, %4 : vector<8x32xf32>
    %cst_5 = arith.constant 0.000000e+00 : f32
    %6 = vector.broadcast %cst_5 : f32 to vector<8x32xf32>
    %7 = arith.maximumf %5, %6 : vector<8x32xf32>
    %8 = arith.truncf %7 : vector<8x32xf32> to vector<8x32xbf16>
    %c0_6 = arith.constant 0 : index
    %c0_7 = arith.constant 0 : index
    %9 = vector.load %arg4[%c0_6, %c0_7] : memref<32x32xbf16, #tpu.memory_space<vmem>>, vector<32x32xbf16>
    %cst_8 = arith.constant dense<0.000000e+00> : vector<8x32xf32>
    %10 = tpu.matmul %8, %9, %cst_8 {dimension_numbers = #tpu.dot_dimension_numbers<[1], [0], [0], [1], [0, 0, 1, 1], [], []>} : vector<8x32xbf16>, vector<32x32xbf16>, vector<8x32xf32> -> vector<8x32xf32>
    %c0_9 = arith.constant 0 : index
    %c0_10 = arith.constant 0 : index
    %11 = vector.load %arg5[%c0_9, %c0_10] : memref<1x32xf32, #tpu.memory_space<vmem>>, vector<1x32xf32>
    %12 = vector.broadcast %11 : vector<1x32xf32> to vector<8x32xf32>
    %13 = arith.addf %10, %12 : vector<8x32xf32>
    %cst_11 = arith.constant 0.000000e+00 : f32
    %14 = vector.broadcast %cst_11 : f32 to vector<8x32xf32>
    %15 = arith.maximumf %13, %14 : vector<8x32xf32>
    %c0_12 = arith.constant 0 : index
    %c0_13 = arith.constant 0 : index
    %16 = vector.load %arg6[%c0_12, %c0_13] : memref<1x32xf32, #tpu.memory_space<vmem>>, vector<1x32xf32>
    %17 = vector.broadcast %16 : vector<1x32xf32> to vector<8x32xf32>
    %18 = arith.mulf %15, %17 : vector<8x32xf32>
    %cst_14 = arith.constant dense<0.000000e+00> : vector<8xf32>
    %19 = vector.multi_reduction <add>, %18, %cst_14 [1] : vector<8x32xf32> to vector<8xf32>
    %20 = vector.shape_cast %19 : vector<8xf32> to vector<8x1xf32>
    %c0_15 = arith.constant 0 : index
    %c0_16 = arith.constant 0 : index
    %21 = memref.load %arg7[%c0_15, %c0_16] : memref<1x1xf32, #tpu.memory_space<smem>>
    %22 = vector.broadcast %21 : f32 to vector<8x1xf32>
    %23 = arith.addf %20, %22 : vector<8x1xf32>
    %c0_17 = arith.constant 0 : index
    %c0_18 = arith.constant 0 : index
    %24 = vector.load %arg8[%c0_17, %c0_18] : memref<8x1xf32, #tpu.memory_space<vmem>>, vector<8x1xf32>
    tpu.vector_store %arg8[%c0_17, %c0_18], %23 {strides = array<i32>} : memref<8x1xf32, #tpu.memory_space<vmem>>, vector<8x1xf32>,
    return
  }
  func.func @transform_0(%arg0: i32) -> (i32, i32) {
    %c0_i32 = arith.constant 0 : i32
    %c0_i32_0 = arith.constant 0 : i32
    return %arg0, %c0_i32 : i32, i32
  }
  func.func @transform_1(%arg0: i32) -> (i32, i32) {
    %c0_i32 = arith.constant 0 : i32
    %c0_i32_0 = arith.constant 0 : i32
    %c0_i32_1 = arith.constant 0 : i32
    return %c0_i32, %c0_i32_0 : i32, i32
  }
  func.func @transform_2(%arg0: i32) -> (i32, i32) {
    %c0_i32 = arith.constant 0 : i32
    %c0_i32_0 = arith.constant 0 : i32
    %c0_i32_1 = arith.constant 0 : i32
    return %c0_i32, %c0_i32_0 : i32, i32
  }
  func.func @transform_3(%arg0: i32) -> (i32, i32) {
    %c0_i32 = arith.constant 0 : i32
    %c0_i32_0 = arith.constant 0 : i32
    %c0_i32_1 = arith.constant 0 : i32
    return %c0_i32, %c0_i32_0 : i32, i32
  }
  func.func @transform_4(%arg0: i32) -> (i32, i32) {
    %c0_i32 = arith.constant 0 : i32
    %c0_i32_0 = arith.constant 0 : i32
    %c0_i32_1 = arith.constant 0 : i32
    return %c0_i32, %c0_i32_0 : i32, i32
  }
  func.func @transform_5(%arg0: i32) -> (i32, i32) {
    %c0_i32 = arith.constant 0 : i32
    %c0_i32_0 = arith.constant 0 : i32
    %c0_i32_1 = arith.constant 0 : i32
    return %c0_i32, %c0_i32_0 : i32, i32
  }
  func.func @transform_6(%arg0: i32) -> (i32, i32) {
    %c0_i32 = arith.constant 0 : i32
    %c0_i32_0 = arith.constant 0 : i32
    %c0_i32_1 = arith.constant 0 : i32
    return %c0_i32, %c0_i32_0 : i32, i32
  }
  func.func @transform_7(%arg0: i32) -> (i32, i32) {
    %c0_i32 = arith.constant 0 : i32
    %c0_i32_0 = arith.constant 0 : i32
    return %arg0, %c0_i32 : i32, i32
  }
}

</mosaic_0001>

<bundles_post_ra>
// kernel: value_net_forward.1
= control target key start
LH: loop header
LB: loop body
LE: loop exit
PB: predicated region body
PF: predicated region fallthrough
CT: control target
= control target key end

     0   :  { %v210_v0 = vmov 0.0   ;;  %vm211_vm0 = vmmov 0   ;;  %vm44_vm1 = vcmask 130048   ;;  %vm113_vm2 = vcmask 261120   ;;  %s279_s1 = inlined_call_operand.vmem [shape: bf16[16,32], index: 1, kind: input, shape index: {}]   ;;  %s280_s0 = inlined_call_operand.vmem [shape: bf16[8,16], index: 0, kind: input, shape index: {}]   ;;  %s281_s3 = inlined_call_operand.vmem [shape: bf16[32,32], index: 3, kind: input, shape index: {}]   ;;  %s282_s2 = inlined_call_operand.vmem [shape: f32[1,32], index: 2, kind: input, shape index: {}]   ;;  %s283_s4 = inlined_call_operand.vmem [shape: f32[1,32], index: 4, kind: input, shape index: {}]   ;;  %s284_s5 = inlined_call_operand.vmem [shape: f32[1,32], index: 5, kind: input, shape index: {}]   ;;  %s285_s6 = inlined_call_operand.<no memory space> [shape: f32[1,1], index: 6, kind: input, shape index: {}]   ;;  %s286_s7 = inlined_call_operand.vmem [shape: f32[8,1], index: 7, kind: output, shape index: {}]  }
   0x1   :  { %191 = vmatprep.subr.bf16.mxu0 %v210_v0  ;;  %v207_v1 = vld [vmem:[%s279_s1] sm:$0xff]   ;;  %193 = vmatprep.mubr.msk.bf16.mxu0 %vm211_vm0, %v210_v0  ;;  %v209_v4 = vld [vmem:[%s281_s3 + $0x8] sm:$0xff]   ;;  %v170_v23 = vstv %s285_s6  ;;  %vm172_vm3 = vcmask 7168  }
   0x2   :  { %197 = vmatprep.subr.bf16.mxu1 %v210_v0  ;;  %201 = vmatprep.mubr.msk.bf16.mxu1 %vm211_vm0, %v210_v0  ;;  %v28_v2 = vld [vmem:[%s280_s0] sm:$0xf] }
   0x3   :  { %192 = vmatpush3.bf16.msra.mxu0 %v207_v1  ;;  %v208_v3 = vld [vmem:[%s281_s3] sm:$0xff]  }
   0x4   :  { %198 = vmatpush3.bf16.msra.mxu1 %v208_v3  ;;  %v178_v5 = vld [vmem:[%s282_s2] ss:$0 sm:$0xff] }
   0x5   :  { %199 = vmatprep.subr.bf16.mxu1 %v210_v0  ;;  %v181_v13 = vld [vmem:[%s283_s4] ss:$0 sm:$0xff] }
   0x6   :  { %194 = vmatmul.mubr.msk.bf16.vlgmr.msra.gmra.mrb[0].mxu0 %vm44_vm1, %v28_v2  ;;  %v185_v18 = vld [vmem:[%s284_s5] ss:$0 sm:$0xff] }
   0x8   :  { %200 = vmatpush3.bf16.msra.mxu1 %v209_v4 }
  0xd9   :  { %v82_v6 = vpop.f32.mrb[0].mxu0 }
  0xda   :  { %v83_v7 = vadd.f32 %v178_v5, %v82_v6  ;;  %v195_v8 = vpop.f32.mrb[1].mxu0 }
  0xdb   :  { %v85_v9 = vpop.f32.mrb[2].mxu0 }
  0xdc   :  { %v88_v10 = vmax.f32 %v83_v7, 0.0  ;;  %v196_v11 = vpop.f32.mrb[3].mxu0 }
  0xde   :  { %v89_v12 = vpack.c.bf16 %v88_v10, %v88_v10 }
  0xe0   :  { %202 = vmatmul.mubr.msk.bf16.vlgmr.msra.gmra.mrb[0].mxu1 %vm113_vm2, %v89_v12 }
 0x1b3   :  { %v151_v14 = vpop.f32.mrb[0].mxu1 }
 0x1b4   :  { %v152_v15 = vadd.f32 %v181_v13, %v151_v14  ;;  %v203_v16 = vpop.f32.mrb[1].mxu1 }
 0x1b5   :  { %v154_v17 = vpop.f32.mrb[2].mxu1 }
 0x1b6   :  { %v157_v19 = vmax.f32 %v152_v15, 0.0  ;;  %v204_v20 = vpop.f32.mrb[3].mxu1 }
 0x1b8   :  { %v165_v21 = vmul.f32 %v185_v18, %v157_v19 }
 0x1ba   :  { %v166_v22 = vsel %vm113_vm2, %v165_v21, 0.0 }
 0x1bb   :  { %167 = vadd.xlane.f32.xlu0 %v166_v22 }
 0x248   :  { %v168_v24 = vpop.xlane.xlu0 %167 }
 0x249   :  { %v171_v25 = vadd.f32 %v170_v23, %v168_v24 }
 0x24b   :  { %173 = vst.msk [vmem:[%s286_s7] sm:$0xff] %vm172_vm3, %v171_v25 }

</bundles_post_ra>
